<compile_context>
chip_gen: v7x
topology: tpu7x:2x2x1
jax: 0.10.0
libtpu: 0.0.40
codegen_flags: <defaults>
</compile_context>

<pallas_src>
import functools

import jax
import jax.numpy as jnp
from jax.experimental import pallas as pl
from jax.experimental.pallas import tpu as pltpu


# ---------------------------------------------------------------------------
# VMEM / layout accounting helpers
# ---------------------------------------------------------------------------

def _sublane_multiple(dtype):
    return {4: 8, 2: 16, 1: 32}.get(jnp.dtype(dtype).itemsize, 8)


def _round_up(n, m):
    return -(-n // m) * m


def _padded_tile_bytes(rows, cols, dtype):
    """Bytes of a (rows, cols) tile once padded to the TPU (sublane, 128) layout."""
    itemsize = jnp.dtype(dtype).itemsize
    return _round_up(rows, _sublane_multiple(dtype)) * _round_up(cols, 128) * itemsize


def _device_vmem_bytes():
    """Physical VMEM per TensorCore; conservative fallback if the query fails."""
    try:
        info = pltpu.get_tpu_info()
        cap = getattr(info, "vmem_capacity_bytes", None)
        if cap:
            return int(cap)
    except Exception:
        pass
    return 64 << 20  # v7x-sized (smallest of v5e/v6e/v7x) -> always safe


def _pick_bt(B, per_sample_bytes, target_bytes, max_block_bytes):
    """Samples per block: ~target bytes per slab (capped by the VMEM budget),
    divisor of B, >= 2 grid steps when possible, and an even grid length when
    divisors allow (v7x shards the parallel axis across 2 TensorCores)."""
    budget = max(per_sample_bytes, min(target_bytes, max_block_bytes))
    bt = max(1, int(budget // max(per_sample_bytes, 1)))
    bt = min(bt, B)
    while B % bt:
        bt -= 1
    if B // bt < 2 and B >= 2:
        bt = max(1, B // 2)
        while B % bt:
            bt -= 1
    if B >= 2 and (B // bt) % 2:
        cand = bt - 1
        while cand >= max(1, bt // 2):
            if B % cand == 0 and (B // cand) % 2 == 0:
                bt = cand
                break
            cand -= 1
    return bt


# ---------------------------------------------------------------------------
# Kernels
# ---------------------------------------------------------------------------

def _se_kernel(x_ref, w1t_ref, b1_ref, w2t_ref, b2_ref, o_ref):
    # Squeeze: global sum over spatial (the 1/HW mean is folded into w1t on the
    # host side).  Reduce straight from the ref; the slab is re-read for the
    # scale below so nothing multi-MB stays live across the excite matmuls.
    pooled = jnp.sum(x_ref[...].astype(jnp.float32), axis=-1)          # (Bt, C)

    # Excite: the two 1x1 convs on the pooled vector == small matmuls.
    h = jnp.dot(pooled, w1t_ref[...], preferred_element_type=jnp.float32)
    h = jnp.maximum(h + b1_ref[...].astype(jnp.float32), 0.0)          # (Bt, mid)
    s = jnp.dot(h, w2t_ref[...], preferred_element_type=jnp.float32)
    s = jax.nn.sigmoid(s + b2_ref[...].astype(jnp.float32))            # (Bt, C)

    # Scale: broadcast the per-(sample, channel) gate over the lane axis.
    o_ref[...] = (x_ref[...] * s[:, :, None].astype(x_ref.dtype)).astype(o_ref.dtype)


def _pool_kernel(x_ref, pooled_ref, *, hw_total, thw):
    # x block: (1, C, thw); pooled block: (1, C, 1) f32 accumulator.
    h = pl.program_id(1)

    @pl.when(h == 0)
    def _():
        pooled_ref[...] = jnp.zeros_like(pooled_ref)

    x = x_ref[...].astype(jnp.float32)
    if hw_total % thw:  # mask the out-of-range tail of the last spatial tile
        lane = jax.lax.broadcasted_iota(jnp.int32, x.shape, 2)
        x = jnp.where(h * thw + lane < hw_total, x, 0.0)
    pooled_ref[...] += jnp.sum(x, axis=-1, keepdims=True)


def _scale_kernel(x_ref, g_ref, o_ref):
    # x block: (1, C, thw); gate block: (1, C, 1).
    o_ref[...] = (x_ref[...] * g_ref[...].astype(x_ref.dtype)).astype(o_ref.dtype)


# ---------------------------------------------------------------------------
# Wrapper
# ---------------------------------------------------------------------------

@jax.jit
def se_block(x, w_reduce, b_reduce, w_expand, b_expand):
    """
    x:         (B, C, H, W)  NCHW, same as PyTorch
    w_reduce:  (mid, C)      1x1 conv weight squeezed from (mid, C, 1, 1)
    b_reduce:  (mid,)
    w_expand:  (C, mid)      squeezed from (C, mid, 1, 1)
    b_expand:  (C,)
    returns:   (B, C, H, W)
    """
    B, C, H, W = x.shape
    mid = w_reduce.shape[0]
    HW = H * W
    dtype = x.dtype
    itemsize = jnp.dtype(dtype).itemsize

    x_flat = x.reshape(B, C, HW)

    # Generation-aware VMEM budget (v7x: 64 MiB/TC, v5e/v6e: 128 MiB).
    vmem_cap = _device_vmem_bytes()
    vmem_budget = max(int(0.72 * vmem_cap), 16 << 20)
    block_target = (8 << 20) if vmem_cap >= (96 << 20) else (5 << 20)
    headroom = 2 << 20

    # Weights in the model dtype; 1/HW folded into the reduce weight; both
    # pre-transposed for row-major dots in the kernel.
    w1t = (w_reduce.astype(jnp.float32) * (1.0 / HW)).T.astype(dtype)   # (C, mid)
    w2t = w_expand.T.astype(dtype)                                      # (mid, C)
    b1 = b_reduce.reshape(1, mid).astype(dtype)
    b2 = b_expand.reshape(1, C).astype(dtype)

    weight_bytes = (_padded_tile_bytes(C, mid, dtype)
                    + _padded_tile_bytes(mid, C, dtype)
                    + _padded_tile_bytes(1, mid, dtype)
                    + _padded_tile_bytes(1, C, dtype))

    # Padded (layout-aware) footprint of one (C, HW) sample slab in VMEM.
    per_sample_padded = _padded_tile_bytes(C, HW, dtype)

    fits_resident = (4 * per_sample_padded + 2 * weight_bytes + headroom) <= vmem_budget

    if fits_resident:
        # ----- Main path: whole (Bt, C, HW) slab per grid step, one pass. -----
        max_block_bytes = max(per_sample_padded,
                              (vmem_budget - 2 * weight_bytes - headroom) // 4)
        bt = _pick_bt(B, per_sample_padded, block_target, max_block_bytes)
        grid = (B // bt,)

        block_bytes = bt * per_sample_padded
        vmem_limit = int(4 * block_bytes + 2 * weight_bytes + headroom)
        vmem_limit = min(max(vmem_limit, 16 << 20), vmem_budget)

        cost = pl.CostEstimate(
            flops=2 * B * C * HW + 4 * B * C * mid,       # pool + scale + 2 matmuls
            transcendentals=B * C,                        # sigmoid
            bytes_accessed=2 * B * C * HW * itemsize
                           + (w1t.size + w2t.size + b1.size + b2.size) * itemsize,
        )

        out_flat = pl.pallas_call(
            _se_kernel,
            out_shape=jax.ShapeDtypeStruct((B, C, HW), dtype),
            grid_spec=pltpu.PrefetchScalarGridSpec(
                num_scalar_prefetch=0,
                grid=grid,
                in_specs=[
                    pl.BlockSpec((bt, C, HW), lambda b: (b, 0, 0)),   # x slab
                    pl.BlockSpec((C, mid), lambda b: (0, 0)),         # w_reduce.T/HW
                    pl.BlockSpec((1, mid), lambda b: (0, 0)),         # b_reduce
                    pl.BlockSpec((mid, C), lambda b: (0, 0)),         # w_expand.T
                    pl.BlockSpec((1, C), lambda b: (0, 0)),           # b_expand
                ],
                out_specs=pl.BlockSpec((bt, C, HW), lambda b: (b, 0, 0)),
            ),
            compiler_params=pltpu.CompilerParams(
                dimension_semantics=("parallel",),
                vmem_limit_bytes=vmem_limit,
            ),
            cost_estimate=cost,
        )(x_flat, w1t, b1, w2t, b2)

    else:
        # ----- Tiled path: per-sample slab too big to double-buffer. ----------
        # Pass 1 pools over HW tiles into a (B, C, 1) f32 accumulator, the tiny
        # excite runs in plain JAX, pass 2 re-reads x and applies the gate.
        bytes_per_128 = _round_up(C, _sublane_multiple(dtype)) * 128 * itemsize
        max_chunks = max(1, (vmem_budget - headroom) // (6 * bytes_per_128))
        tgt_chunks = max(1, block_target // bytes_per_128)
        chunks = max(1, min(pl.cdiv(HW, 128), min(max_chunks, tgt_chunks)))
        thw = 128 * chunks
        nhw = pl.cdiv(HW, thw)

        tile_bytes = _padded_tile_bytes(C, thw, dtype)
        vmem_limit = min(max(int(6 * tile_bytes + 2 * weight_bytes + headroom),
                             16 << 20), vmem_budget)

        pooled = pl.pallas_call(
            functools.partial(_pool_kernel, hw_total=HW, thw=thw),
            out_shape=jax.ShapeDtypeStruct((B, C, 1), jnp.float32),
            grid_spec=pltpu.PrefetchScalarGridSpec(
                num_scalar_prefetch=0,
                grid=(B, nhw),
                in_specs=[pl.BlockSpec((1, C, thw), lambda b, h: (b, 0, h))],
                out_specs=pl.BlockSpec((1, C, 1), lambda b, h: (b, 0, 0)),
            ),
            compiler_params=pltpu.CompilerParams(
                dimension_semantics=("parallel", "arbitrary"),
                vmem_limit_bytes=vmem_limit,
            ),
        )(x_flat)[:, :, 0]                                            # (B, C) sums

        # Tiny excite (B x C), done in plain JAX — negligible vs. HBM traffic.
        hmid = jnp.maximum(pooled @ w1t.astype(jnp.float32)
                           + b1.astype(jnp.float32), 0.0)             # (B, mid)
        gate = jax.nn.sigmoid(hmid @ w2t.astype(jnp.float32)
                              + b2.astype(jnp.float32))               # (B, C)
        gate = gate.astype(dtype)[:, :, None]                         # (B, C, 1)

        out_flat = pl.pallas_call(
            _scale_kernel,
            out_shape=jax.ShapeDtypeStruct((B, C, HW), dtype),
            grid_spec=pltpu.PrefetchScalarGridSpec(
                num_scalar_prefetch=0,
                grid=(B, nhw),
                in_specs=[pl.BlockSpec((1, C, thw), lambda b, h: (b, 0, h)),
                          pl.BlockSpec((1, C, 1), lambda b, h: (b, 0, 0))],
                out_specs=pl.BlockSpec((1, C, thw), lambda b, h: (b, 0, h)),
            ),
            compiler_params=pltpu.CompilerParams(
                dimension_semantics=("parallel", "parallel"),
                vmem_limit_bytes=vmem_limit,
            ),
        )(x_flat, gate)

    return out_flat.reshape(B, C, H, W)


# ---------------------------------------------------------------------------
# Reference + test
# ---------------------------------------------------------------------------

def _reference(x, w1, b1, w2, b2):
    # Pure-JAX reference of the SEBlock forward pass (NCHW, 1x1 convs).
    pooled = jnp.mean(x, axis=(2, 3))                       # (B, C)
    h = jnp.maximum(pooled @ w1.T + b1, 0.0)                # (B, mid)
    s = jax.nn.sigmoid(h @ w2.T + b2)                       # (B, C)
    return x * s[:, :, None, None]


if __name__ == "__main__":
    key = jax.random.PRNGKey(0)
    k_x, k_w1, k_b1, k_w2, k_b2 = jax.random.split(key, 5)

    B, C, H, W = 2, 4, 16, 16
    scale = 0.25
    mid = int(C * scale)   # = 1

    x = jax.random.normal(k_x, (B, C, H, W), dtype=jnp.float32)
    # Deterministic synthetic parameters (1x1 conv weights squeezed to 2D).
    w_reduce = jax.random.normal(k_w1, (mid, C), dtype=jnp.float32) * 0.5
    b_reduce = jax.random.normal(k_b1, (mid,), dtype=jnp.float32) * 0.1
    w_expand = jax.random.normal(k_w2, (C, mid), dtype=jnp.float32) * 0.5
    b_expand = jax.random.normal(k_b2, (C,), dtype=jnp.float32) * 0.1

    out = se_block(x, w_reduce, b_reduce, w_expand, b_expand)
    out = jax.block_until_ready(out)

    ref = _reference(x, w_reduce, b_reduce, w_expand, b_expand)
    assert out.shape == x.shape
    assert jnp.allclose(out, ref, atol=1e-5, rtol=1e-5), "mismatch vs reference"

    print("KERNEL_OK")
</pallas_src>

<mosaic_0001>
module attributes {stable_mosaic.version = 11 : i64} {
  func.func @_se_kernel(%arg0: i32, %arg1: memref<1x4x256xf32, #tpu.memory_space<vmem>>, %arg2: memref<4x1xf32, #tpu.memory_space<vmem>>, %arg3: memref<1x1xf32, #tpu.memory_space<vmem>>, %arg4: memref<1x4xf32, #tpu.memory_space<vmem>>, %arg5: memref<1x4xf32, #tpu.memory_space<vmem>>, %arg6: memref<1x4x256xf32, #tpu.memory_space<vmem>>) attributes {dimension_semantics = [#tpu.dimension_semantics<parallel>], iteration_bounds = array<i64: 2>, scalar_prefetch = 0 : i64, scratch_operands = 0 : i64, tpu.core_type = #tpu.core_type<tc>, window_params = [{transform_indices = @transform_0, window_bounds = array<i64: 1, 4, 256>}, {pipeline_mode = #tpu.pipeline_mode<synchronous>, transform_indices = @transform_1, window_bounds = array<i64: 4, 1>}, {pipeline_mode = #tpu.pipeline_mode<synchronous>, transform_indices = @transform_2, window_bounds = array<i64: 1, 1>}, {pipeline_mode = #tpu.pipeline_mode<synchronous>, transform_indices = @transform_3, window_bounds = array<i64: 1, 4>}, {pipeline_mode = #tpu.pipeline_mode<synchronous>, transform_indices = @transform_4, window_bounds = array<i64: 1, 4>}, {transform_indices = @transform_5, window_bounds = array<i64: 1, 4, 256>}]} {
    %c0 = arith.constant 0 : index
    %c0_0 = arith.constant 0 : index
    %c0_1 = arith.constant 0 : index
    %0 = vector.load %arg1[%c0, %c0_0, %c0_1] : memref<1x4x256xf32, #tpu.memory_space<vmem>>, vector<1x4x256xf32>
    %cst = arith.constant dense<0.000000e+00> : vector<1x4xf32>
    %1 = vector.multi_reduction <add>, %0, %cst [2] : vector<1x4x256xf32> to vector<1x4xf32>
    %c0_2 = arith.constant 0 : index
    %c0_3 = arith.constant 0 : index
    %2 = vector.load %arg2[%c0_2, %c0_3] : memref<4x1xf32, #tpu.memory_space<vmem>>, vector<4x1xf32>
    %cst_4 = arith.constant dense<0.000000e+00> : vector<1x1xf32>
    %3 = tpu.matmul %1, %2, %cst_4 {dimension_numbers = #tpu.dot_dimension_numbers<[1], [0], [0], [1], [0, 0, 1, 1], [], []>} : vector<1x4xf32>, vector<4x1xf32>, vector<1x1xf32> -> vector<1x1xf32>
    %c0_5 = arith.constant 0 : index
    %c0_6 = arith.constant 0 : index
    %4 = vector.load %arg3[%c0_5, %c0_6] : memref<1x1xf32, #tpu.memory_space<vmem>>, vector<1x1xf32>
    %5 = arith.addf %3, %4 : vector<1x1xf32>
    %cst_7 = arith.constant 0.000000e+00 : f32
    %6 = vector.broadcast %cst_7 : f32 to vector<1x1xf32>
    %7 = arith.maximumf %5, %6 : vector<1x1xf32>
    %c0_8 = arith.constant 0 : index
    %c0_9 = arith.constant 0 : index
    %8 = vector.load %arg4[%c0_8, %c0_9] : memref<1x4xf32, #tpu.memory_space<vmem>>, vector<1x4xf32>
    %cst_10 = arith.constant dense<0.000000e+00> : vector<1x4xf32>
    %9 = tpu.matmul %7, %8, %cst_10 {dimension_numbers = #tpu.dot_dimension_numbers<[1], [0], [0], [1], [0, 0, 1, 1], [], []>} : vector<1x1xf32>, vector<1x4xf32>, vector<1x4xf32> -> vector<1x4xf32>
    %c0_11 = arith.constant 0 : index
    %c0_12 = arith.constant 0 : index
    %10 = vector.load %arg5[%c0_11, %c0_12] : memref<1x4xf32, #tpu.memory_space<vmem>>, vector<1x4xf32>
    %11 = arith.addf %9, %10 : vector<1x4xf32>
    %12 = arith.negf %11 : vector<1x4xf32>
    %13 = math.exp %12 : vector<1x4xf32>
    %cst_13 = arith.constant 1.000000e+00 : f32
    %14 = vector.broadcast %cst_13 : f32 to vector<1x4xf32>
    %15 = arith.addf %14, %13 : vector<1x4xf32>
    %16 = arith.divf %14, %15 : vector<1x4xf32>
    %c0_14 = arith.constant 0 : index
    %c0_15 = arith.constant 0 : index
    %c0_16 = arith.constant 0 : index
    %17 = vector.load %arg1[%c0_14, %c0_15, %c0_16] : memref<1x4x256xf32, #tpu.memory_space<vmem>>, vector<1x4x256xf32>
    %18 = vector.shape_cast %16 : vector<1x4xf32> to vector<1x4x1xf32>
    %19 = vector.broadcast %18 : vector<1x4x1xf32> to vector<1x4x256xf32>
    %20 = arith.mulf %17, %19 : vector<1x4x256xf32>
    %c0_17 = arith.constant 0 : index
    %c0_18 = arith.constant 0 : index
    %c0_19 = arith.constant 0 : index
    %21 = vector.load %arg6[%c0_17, %c0_18, %c0_19] : memref<1x4x256xf32, #tpu.memory_space<vmem>>, vector<1x4x256xf32>
    tpu.vector_store %arg6[%c0_17, %c0_18, %c0_19], %20 {strides = array<i32>} : memref<1x4x256xf32, #tpu.memory_space<vmem>>, vector<1x4x256xf32>,
    return
  }
  func.func @transform_0(%arg0: i32) -> (i32, i32, i32) {
    %c0_i32 = arith.constant 0 : i32
    %c0_i32_0 = arith.constant 0 : i32
    %c0_i32_1 = arith.constant 0 : i32
    return %arg0, %c0_i32, %c0_i32_0 : i32, i32, i32
  }
  func.func @transform_1(%arg0: i32) -> (i32, i32) {
    %c0_i32 = arith.constant 0 : i32
    %c0_i32_0 = arith.constant 0 : i32
    %c0_i32_1 = arith.constant 0 : i32
    return %c0_i32, %c0_i32_0 : i32, i32
  }
  func.func @transform_2(%arg0: i32) -> (i32, i32) {
    %c0_i32 = arith.constant 0 : i32
    %c0_i32_0 = arith.constant 0 : i32
    %c0_i32_1 = arith.constant 0 : i32
    return %c0_i32, %c0_i32_0 : i32, i32
  }
  func.func @transform_3(%arg0: i32) -> (i32, i32) {
    %c0_i32 = arith.constant 0 : i32
    %c0_i32_0 = arith.constant 0 : i32
    %c0_i32_1 = arith.constant 0 : i32
    return %c0_i32, %c0_i32_0 : i32, i32
  }
  func.func @transform_4(%arg0: i32) -> (i32, i32) {
    %c0_i32 = arith.constant 0 : i32
    %c0_i32_0 = arith.constant 0 : i32
    %c0_i32_1 = arith.constant 0 : i32
    return %c0_i32, %c0_i32_0 : i32, i32
  }
  func.func @transform_5(%arg0: i32) -> (i32, i32, i32) {
    %c0_i32 = arith.constant 0 : i32
    %c0_i32_0 = arith.constant 0 : i32
    %c0_i32_1 = arith.constant 0 : i32
    return %arg0, %c0_i32, %c0_i32_0 : i32, i32, i32
  }
}

</mosaic_0001>

<bundles_post_ra>
// kernel: se_block.1
= control target key start
LH: loop header
LB: loop body
LE: loop exit
PB: predicated region body
PF: predicated region fallthrough
CT: control target
= control target key end

     0   :  { %s574_s20 = smov 0   ;;  %s607_s0 = inlined_call_operand.vmem [shape: f32[2,4,256], index: 0, kind: input, shape index: {}]   ;;  %s608_s1 = inlined_call_operand.vmem [shape: f32[4,1], index: 1, kind: input, shape index: {}]   ;;  %s609_s2 = inlined_call_operand.<no memory space> [shape: f32[1,1], index: 2, kind: input, shape index: {}]   ;;  %s610_s3 = inlined_call_operand.vmem [shape: f32[1,4], index: 3, kind: input, shape index: {}]   ;;  %s611_s4 = inlined_call_operand.vmem [shape: f32[1,4], index: 4, kind: input, shape index: {}]   ;;  %s612_s5 = inlined_call_operand.vmem [shape: f32[2,4,256], index: 5, kind: output, shape index: {}]  }
   0x1   :  { %v10_v0 = vstv %s609_s2 }
   0x2   :  { %11 = vst [vmem:[#allocation2] sm:$0x1] %v10_v0 }
   0x3 LB: > { %s482_s21 = sadd.s32 4294967295, %s536_s20   ;;  %p486_p0 = scmp.ge.s32.totalorder %s536_s20, 1  ;;  %s536_s20 = sphi %s574_s20, %s17_s20  }
   0x4   : > { %p189_p1 = scmp.lt.s32.totalorder %s536_s20, 3 }
   0x6   : > { %p190_p2 = pnand %p486_p0, %p189_p1 }
   0x7   : > { %p217_p3 = scmp.lt.s32.totalorder (!%p190_p2), %s482_s21, 1  ;;  %vm231_vm0 = vcmask (!%p190_p2), 1043456   ;;  %v538_v6 = vmov (!%p190_p2), 0.0   ;;  %v237_v7 = vld [vmem:[%s608_s1] sm:$0xf] (!%p190_p2)  ;;  %vm539_vm1 = vmmov (!%p190_p2), 0   ;;  %v240_v8 = vlaneseq (!%p190_p2) }
   0x8   : > { %193 = sbr.rel (%p190_p2) target bundleno = 746 (0x2ea), region = 40  ;;  %504 = vmatprep.subr.mxu0 (!%p190_p2), %v538_v6  ;;  %509 = vmatprep.subr.mxu1 (!%p190_p2), %v538_v6  ;;  %vm246_vm2 = vcmask (!%p190_p2), 31744   ;;  %v323_v14 = vld [vmem:[%s610_s3] sm:$0x1] (!%p190_p2)  ;;  %vm329_vm3 = vcmask (!%p190_p2), 1040384   ;;  %vm325_vm4 = vcmask (!%p190_p2), 7168  }
   0x9   : > { %505 = vmatpush3.msk.msra.mxu0 (!%p190_p2), %vm231_vm0, %v237_v7  ;;  %506 = vmatprep.mubr.msk.f32.mxu0 (!%p190_p2), %vm539_vm1, %v538_v6  ;;  %v241_v9 = vand.u32 (!%p190_p2), 127, %v240_v8  ;;  %v243_v10 = vshrl.u32 (!%p190_p2), %v240_v8, 7  ;;  %v238_v15 = vld [vmem:[#allocation2] sm:$0x1] (!%p190_p2)  ;;  %v540_v30 = vmov (!%p190_p2), 839922192  }
   0xa   : > { %511 = vmatprep.mubr.msk.f32.mxu1 (!%p190_p2), %vm539_vm1, %v538_v6  ;;  %510 = vmatpush3.msk.msra.mxu1 (!%p190_p2), %vm329_vm3, %v323_v14  ;;  %v324_v20 = vld [vmem:[%s611_s4] sm:$0x1] (!%p190_p2)  ;;  %v418_v31 = vunpack.c.l.s4 (!%p190_p2), %v540_v30 }
   0xb   : > { %v244_v11 = vsub.s32 (!%p190_p2), %v241_v9, %v243_v10  ;;  %v411_v27 = vsub.s32 (!%p190_p2), 0, %v243_v10 }
   0xc   : > { %v419_v32 = vunpack.c.0.s8 (!%p190_p2), %v418_v31 }
   0xe   : > { %v422_v33 = vsub.s32 (!%p190_p2), %v419_v32, %v243_v10 }
   0xf   : > { %s614_s21 = smov (!%p217_p3, %s482_s21), 1 }
  0x10   : > { %s498_s2 = sshll.u32 %s614_s21, 3 }
  0x11   : > { %s221_s24 = scalar_lea.vmem %s607_s0, %s498_s2  ;;  %s226_s8 = scalar_lea.vmem %s612_s5, %s498_s2 }
  0x12   : > { %v227_v1 = vld [vmem:[%s221_s24] sm:$0xff] }
  0x13   : > { %v229_v2 = vcombine.high %v227_v1, %v227_v1  ;;  %v232_v3 = vsel %vm231_vm0, %v227_v1, 0.0 }
  0x15   : > { %v233_v4 = vsel %vm231_vm0, %v229_v2, 0.0 }
  0x16   : > { %v234_v5 = vadd.f32 %v233_v4, %v232_v3 }
  0x18   : > { %235 = vadd.xlane.f32.xlu0 %v234_v5 }
  0xa5   : > { %v236_v12 = vpop.xlane.xlu0 %235 }
  0xa6   : > { %v245_v13 = vrot.slane %v236_v12, %v244_v11 }
  0xa8   : > { %507 = vmatmul.mubr.msk.f32.vlgmr.msra.gmra.mrb[0].mxu0 %vm246_vm2, %v245_v13 }
 0x17b   : > { %v318_v16 = vpop.f32.mrb[0].mxu0 }
 0x17c   : > { %v319_v17 = vadd.f32 %v318_v16, %v238_v15  ;;  %v508_v18 = vpop.f32.mrb[1].mxu0 }
 0x17e   : > { %v322_v19 = vmax.f32 %v319_v17, 0.0 }
 0x180   : > { %512 = vmatmul.mubr.msk.f32.vlgmr.msra.gmra.mrb[0].mxu1 %vm325_vm4, %v322_v19 }
 0x253   : > { %v399_v21 = vpop.f32.mrb[0].mxu1 }
 0x254   : > { %v400_v22 = vadd.f32 %v399_v21, %v324_v20  ;;  %v513_v23 = vpop.f32.mrb[1].mxu1 }
 0x256   : > { %v495_v24 = vmul.f32 -1.442695, %v400_v22 }
 0x258   : > { %526 = vpow2.f32 %v495_v24 }
 0x262   : > { %v527_v25 = vpop.eup %526 }
 0x263   : > { %v406_v26 = vadd.f32 1.0, %v527_v25 }
 0x265   : > { %528 = vrcp.f32 %v406_v26 }
 0x26f   : > { %v529_v28 = vpop.eup %528 }
 0x270   : > { %v412_v29 = vrot.slane %v529_v28, %v411_v27 }
 0x272   : > { %414 = vbcast.lane.b32.xlu0 %v412_v29, 256 }
 0x2e4   : > { %v415_v34 = vpop.permute.xlu0 %414 }
 0x2e5   : > { %v423_v35 = vrot.slane %v415_v34, %v422_v33 }
 0x2e7   : > { %v425_v36 = vmul.f32 %v423_v35, %v227_v1 }
 0x2e9   : > { %426 = vst [vmem:[%s226_s8] sm:$0xff] %v425_v36 }
 0x2ea PF: > { %s17_s20 = sadd.s32 1, %s536_s20  }
 0x2eb   : > { %p14_p4 = scmp.ge.s32.totalorder %s17_s20, 4  }
 0x2ed   :  { %16 = sbr.rel (!%p14_p4) target bundleno = 3 (0x3), region = 70 }

</bundles_post_ra>
